<compile_context>
chip_gen: v6e
topology: v6e:2x2x1
jax: 0.10.0
libtpu: 0.0.40
codegen_flags: <defaults>
</compile_context>

<pallas_src>
import math
from functools import partial

import jax
import jax.numpy as jnp
from jax.experimental import pallas as pl
from jax.experimental.pallas import tpu as pltpu


_LANES = 128
_SUBLANES = 8
# Block bytes cap: with double-buffered input + output the VMEM footprint is
# ~4x block bytes -> 16 MiB, safely inside the 16/32/32 MiB scoped defaults
# (v5e/v6e/v7x) without touching vmem_limit_bytes.
_MAX_BLOCK_BYTES = 4 * 1024 * 1024


def _copy_kernel(x_ref, o_ref):
    # Straight ref-to-ref identity copy (no extra elementwise work), so the
    # kernel stays purely DMA/HBM-bound on every generation (incl. v5e's
    # single vector-store slot).
    o_ref[...] = x_ref[...]


def _choose_geometry(padded_total, itemsize):
    """Pick (R, C, TR): lane width C (mult of 128), rows R (mult of 8), tile rows TR."""
    c = _LANES
    for cand in (4096, 2048, 1024, 512, 256, 128):
        if padded_total % cand == 0:
            r = padded_total // cand
            # keep the sublane dim dense: >= 8 rows and a multiple of 8
            if r >= _SUBLANES and r % _SUBLANES == 0:
                c = cand
                break
    r = padded_total // c
    tr_cap = max(_SUBLANES,
                 (_MAX_BLOCK_BYTES // (c * itemsize)) // _SUBLANES * _SUBLANES)
    tr = min(r, tr_cap)
    return r, c, tr


@partial(jax.jit, static_argnums=1)
def view_forward(x, shape_args):
    """JAX/Pallas equivalent of View(*shape_args).forward(x)."""
    total = x.size
    tail = int(math.prod(shape_args))
    assert total % tail == 0, "view shape incompatible with input size"
    lead = total // tail
    itemsize = jnp.dtype(x.dtype).itemsize

    # Glue (metadata only under jit): row-major flatten, pad up to an
    # (8, 128)-aligned slab so the block shape is always tile-aligned.
    tile_elems = _SUBLANES * _LANES
    padded_total = pl.cdiv(total, tile_elems) * tile_elems
    flat = x.reshape(-1)
    if padded_total != total:
        flat = jnp.pad(flat, (0, padded_total - total))

    R, C, TR = _choose_geometry(padded_total, itemsize)
    x2 = flat.reshape(R, C)

    out2 = pl.pallas_call(
        _copy_kernel,
        out_shape=jax.ShapeDtypeStruct((R, C), x.dtype),
        grid=(pl.cdiv(R, TR),),
        in_specs=[pl.BlockSpec((TR, C), lambda i: (i, 0))],
        out_specs=pl.BlockSpec((TR, C), lambda i: (i, 0)),
        compiler_params=pltpu.CompilerParams(
            # row tiles are independent -> shard across cores where available
            dimension_semantics=("parallel",),
        ),
        # Purely memory-bound custom call: tell XLA's scheduler so it can
        # overlap neighbouring HLOs around it.
        cost_estimate=pl.CostEstimate(
            flops=0,
            transcendentals=0,
            bytes_accessed=2 * padded_total * itemsize,
        ),
    )(x2)

    # Glue: drop padding and restore the requested trailing shape.
    out_flat = out2.reshape(-1)[:total]
    return out_flat.reshape(lead, *shape_args)


if __name__ == "__main__":
    key = jax.random.PRNGKey(0)
    # Small NCHW input consistent with the module's usage (flatten before a
    # linear layer): batch=2, channels=4, spatial=16x16.
    x = jax.random.normal(key, (2, 4, 16, 16), dtype=jnp.float32)

    # View(4 * 16 * 16)  ->  output shape (-1, 1024) == (2, 1024)
    shape_args = (4 * 16 * 16,)

    y = view_forward(x, shape_args)
    y = jax.block_until_ready(y)

    # Reference semantics check against plain row-major reshape (== torch .view
    # for contiguous tensors).
    y_ref = x.reshape(-1, *shape_args)
    assert y.shape == (2, 1024), y.shape
    assert y.dtype == x.dtype
    assert bool(jnp.array_equal(y, y_ref))

    print("KERNEL_OK")
</pallas_src>

<mosaic_0001>
module attributes {stable_mosaic.version = 11 : i64} {
  func.func @_copy_kernel(%arg0: i32, %arg1: memref<8x256xf32, #tpu.memory_space<vmem>>, %arg2: memref<8x256xf32, #tpu.memory_space<vmem>>) attributes {dimension_semantics = [#tpu.dimension_semantics<parallel>], iteration_bounds = array<i64: 1>, scalar_prefetch = 0 : i64, scratch_operands = 0 : i64, tpu.core_type = #tpu.core_type<tc>, window_params = [{transform_indices = @transform_0, window_bounds = array<i64: 8, 256>}, {transform_indices = @transform_1, window_bounds = array<i64: 8, 256>}]} {
    %c0 = arith.constant 0 : index
    %c0_0 = arith.constant 0 : index
    %0 = vector.load %arg1[%c0, %c0_0] : memref<8x256xf32, #tpu.memory_space<vmem>>, vector<8x256xf32>
    %c0_1 = arith.constant 0 : index
    %c0_2 = arith.constant 0 : index
    %1 = vector.load %arg2[%c0_1, %c0_2] : memref<8x256xf32, #tpu.memory_space<vmem>>, vector<8x256xf32>
    tpu.vector_store %arg2[%c0_1, %c0_2], %0 {strides = array<i32>} : memref<8x256xf32, #tpu.memory_space<vmem>>, vector<8x256xf32>,
    return
  }
  func.func @transform_0(%arg0: i32) -> (i32, i32) {
    %c0_i32 = arith.constant 0 : i32
    %c0_i32_0 = arith.constant 0 : i32
    return %arg0, %c0_i32 : i32, i32
  }
  func.func @transform_1(%arg0: i32) -> (i32, i32) {
    %c0_i32 = arith.constant 0 : i32
    %c0_i32_0 = arith.constant 0 : i32
    return %arg0, %c0_i32 : i32, i32
  }
}

</mosaic_0001>

<bundles_post_ra>
// kernel: view_forward.1
= control target key start
LH: loop header
LB: loop body
LE: loop exit
PB: predicated region body
PF: predicated region fallthrough
CT: control target
= control target key end

     0   :  { %s38_s0 = inlined_call_operand.vmem [shape: f32[8,256], index: 0, kind: input, shape index: {}]   ;;  %s39_s1 = inlined_call_operand.vmem [shape: f32[8,256], index: 1, kind: output, shape index: {}]  }
   0x1   :  { %v8_v0 = vld [vmem:[%s38_s0] sm:$0xff]  ;;  %v9_v1 = vld [vmem:[%s38_s0 + $0x8] sm:$0xff] }
   0x2   :  { %10 = vst [vmem:[%s39_s1] sm:$0xff] %v8_v0  ;;  %11 = vst [vmem:[%s39_s1 + $0x8] sm:$0xff] %v9_v1 }

</bundles_post_ra>
